<compile_context>
chip_gen: v7x
topology: tpu7x:2x2x1
jax: 0.10.0
libtpu: 0.0.40
codegen_flags: <defaults>
</compile_context>

<pallas_src>
import jax
import jax.numpy as jnp
from jax.experimental import pallas as pl
from jax.experimental.pallas import tpu as pltpu


def _round_up(n, m):
    return ((n + m - 1) // m) * m


def _pad2(a, rows, cols):
    r, c = a.shape
    return jnp.pad(a, ((0, rows - r), (0, cols - c)))


def _fcnet_fused_kernel(x_ref, *refs):
    """Whole FCNet forward pass for one batch tile.

    x_ref : VMEM (tm, d0_pad) bf16 input tile.
    refs  : per layer (w_ref bf16 (K_pad, N_pad) with the weight-norm scale
            already folded in, b_ref f32 (1, N_pad)), then o_ref (tm, dL_pad).
    """
    *param_refs, o_ref = refs
    num_layers = len(param_refs) // 2

    h = x_ref[...]                                     # bf16 activations
    for l in range(num_layers):                        # unrolled: static shapes
        w = param_refs[2 * l][...]                     # bf16, scale folded in
        b = param_refs[2 * l + 1][...]                 # f32 (1, N_pad)
        y = jnp.dot(h, w, preferred_element_type=jnp.float32)   # MXU, f32 acc
        act = jnp.maximum(y + b, 0.0)                  # bias + ReLU in f32
        if l + 1 < num_layers:
            h = act.astype(jnp.bfloat16)               # bf16 between layers
        else:
            o_ref[...] = act.astype(o_ref.dtype)       # last layer -> f32 out


def fcnet_forward(x, params, *, block_m=None):
    """Fused FCNet forward: one pallas_call, M-parallel grid, resident weights.

    params: list of (v_t, g, b) with v_t: (in, out) f32 (PyTorch weight,
            pre-transposed), g: (1, 1) f32 gain, b: (1, out) f32 bias.
    """
    M, d0 = x.shape

    # Lane-dense padded feature dims (multiples of 128) for every layer.
    dims = [d0] + [v_t.shape[1] for (v_t, _, _) in params]
    pdims = [_round_up(d, 128) for d in dims]

    # Batch tile: multiple of 8 sublanes; pad M so the grid divides evenly.
    tm = block_m if block_m is not None else min(128, _round_up(max(M, 1), 8))
    tm = _round_up(tm, 8)
    M_pad = _round_up(M, tm)
    grid = (M_pad // tm,)

    # Input tile streamed as bf16 (halves activation DMA bytes).
    x_p = _pad2(x.astype(jnp.float32), M_pad, pdims[0]).astype(jnp.bfloat16)

    flat_inputs = [x_p]
    in_specs = [pl.BlockSpec((tm, pdims[0]), lambda i: (i, 0))]

    flops = 0
    weight_bytes = 0
    for l, (v_t, g, b) in enumerate(params):
        K, N = v_t.shape
        Kp, Np = pdims[l], pdims[l + 1]
        # weight_norm(dim=None): scale = g / ||v||_F, folded into the bf16 cast.
        v32 = v_t.astype(jnp.float32)
        scale = g.reshape(()).astype(jnp.float32) / jnp.sqrt(jnp.sum(v32 * v32))
        w = _pad2(v32 * scale, Kp, Np).astype(jnp.bfloat16)
        bias = _pad2(b.reshape(1, N).astype(jnp.float32), 1, Np)

        flat_inputs += [w, bias]
        # Constant index_map -> weights/bias stay VMEM-resident across M steps.
        in_specs += [pl.BlockSpec((Kp, Np), lambda i: (0, 0)),
                     pl.BlockSpec((1, Np), lambda i: (0, 0))]
        flops += 2 * M_pad * Kp * Np
        weight_bytes += Kp * Np * 2 + Np * 4

    dL, dLp = dims[-1], pdims[-1]
    bytes_accessed = M_pad * pdims[0] * 2 + weight_bytes + M_pad * dLp * 4

    # Scoped-VMEM budget: double-buffered x/out tiles + resident weights +
    # f32 intermediates, with headroom; capped at v7x's 64 MiB physical VMEM.
    per_step = tm * pdims[0] * 2 + tm * dLp * 4
    intermediates = 2 * tm * max(pdims) * 4
    footprint = 2 * per_step + weight_bytes + intermediates + (4 << 20)
    vmem_bytes = int(min(max(footprint, 32 << 20), 64 << 20))

    out_p = pl.pallas_call(
        _fcnet_fused_kernel,
        out_shape=jax.ShapeDtypeStruct((M_pad, dLp), x.dtype),
        grid=grid,
        in_specs=in_specs,
        out_specs=pl.BlockSpec((tm, dLp), lambda i: (i, 0)),
        compiler_params=pltpu.CompilerParams(
            dimension_semantics=("parallel",),
            vmem_limit_bytes=vmem_bytes),
        cost_estimate=pl.CostEstimate(
            flops=flops, transcendentals=0, bytes_accessed=bytes_accessed),
    )(*flat_inputs)

    return out_p[:M, :dL]


def init_fcnet_params(key, dims):
    """Deterministic init mirroring PyTorch defaults.

    nn.Linear: weight, bias ~ U(-1/sqrt(in_dim), 1/sqrt(in_dim)).
    weight_norm(dim=None): v = weight (direction), g = scalar gain = ||w||_F.
    """
    params = []
    for i in range(len(dims) - 1):
        in_dim, out_dim = dims[i], dims[i + 1]
        key, kw, kb = jax.random.split(key, 3)
        bound = 1.0 / jnp.sqrt(jnp.float32(in_dim))
        w = jax.random.uniform(kw, (out_dim, in_dim), jnp.float32,
                               minval=-bound, maxval=bound)
        b = jax.random.uniform(kb, (out_dim,), jnp.float32,
                               minval=-bound, maxval=bound)
        g = jnp.sqrt(jnp.sum(w * w)).reshape(1, 1)     # scalar gain (dim=None)
        v_t = w.T                                      # (in_dim, out_dim)
        params.append((v_t, g, b.reshape(1, out_dim)))
    return params


def fcnet_reference(x, params):
    """Pure-JAX f32 reference with exact weight_norm(dim=None) semantics."""
    h = x
    for (v_t, g, b) in params:
        w = v_t * (g[0, 0] / jnp.sqrt(jnp.sum(v_t * v_t)))
        h = jnp.maximum(h @ w + b, 0.0)
    return h


if __name__ == "__main__":
    key = jax.random.PRNGKey(0)
    kx1, kp1, kx2, kp2 = jax.random.split(key, 4)

    # Case 1: tiny FCNet (single grid step), gains perturbed so the g/||v||
    # scale path is actually exercised.
    dims1 = [32, 64, 128]
    batch1 = 8
    x1 = jax.random.normal(kx1, (batch1, dims1[0]), dtype=jnp.float32)
    params1 = init_fcnet_params(kp1, dims1)
    params1 = [(v_t, g * (0.7 + 0.4 * i), b)
               for i, (v_t, g, b) in enumerate(params1)]

    out1 = jax.block_until_ready(jax.jit(fcnet_forward)(x1, params1))
    ref1 = fcnet_reference(x1, params1)
    assert out1.shape == (batch1, dims1[-1])
    # bf16 weights/activations on the MXU with f32 accumulation vs f32 ref.
    assert jnp.allclose(out1, ref1, atol=5e-2, rtol=5e-2), "case1 mismatch"

    # Case 2: multi-step M grid (batch 320, tile 128) with non-multiple-of-128
    # feature dims and a small head -> exercises lane padding + output slicing.
    dims2 = [48, 96, 40]
    batch2 = 320
    x2 = jax.random.normal(kx2, (batch2, dims2[0]), dtype=jnp.float32)
    params2 = init_fcnet_params(kp2, dims2)

    fwd2 = jax.jit(fcnet_forward, static_argnames=("block_m",))
    out2 = jax.block_until_ready(fwd2(x2, params2, block_m=128))
    ref2 = fcnet_reference(x2, params2)
    assert out2.shape == (batch2, dims2[-1])
    assert jnp.allclose(out2, ref2, atol=5e-2, rtol=5e-2), "case2 mismatch"

    print("KERNEL_OK")
</pallas_src>

<mosaic_0001>
module attributes {stable_mosaic.version = 11 : i64} {
  func.func @_fcnet_fused_kernel(%arg0: i32, %arg1: memref<8x128xbf16, #tpu.memory_space<vmem>>, %arg2: memref<128x128xbf16, #tpu.memory_space<vmem>>, %arg3: memref<1x128xf32, #tpu.memory_space<vmem>>, %arg4: memref<128x128xbf16, #tpu.memory_space<vmem>>, %arg5: memref<1x128xf32, #tpu.memory_space<vmem>>, %arg6: memref<8x128xf32, #tpu.memory_space<vmem>>) attributes {dimension_semantics = [#tpu.dimension_semantics<parallel>], iteration_bounds = array<i64: 1>, scalar_prefetch = 0 : i64, scratch_operands = 0 : i64, tpu.core_type = #tpu.core_type<tc>, window_params = [{transform_indices = @transform_0, window_bounds = array<i64: 8, 128>}, {pipeline_mode = #tpu.pipeline_mode<synchronous>, transform_indices = @transform_1, window_bounds = array<i64: 128, 128>}, {pipeline_mode = #tpu.pipeline_mode<synchronous>, transform_indices = @transform_2, window_bounds = array<i64: 1, 128>}, {pipeline_mode = #tpu.pipeline_mode<synchronous>, transform_indices = @transform_3, window_bounds = array<i64: 128, 128>}, {pipeline_mode = #tpu.pipeline_mode<synchronous>, transform_indices = @transform_4, window_bounds = array<i64: 1, 128>}, {transform_indices = @transform_5, window_bounds = array<i64: 8, 128>}]} {
    %c0 = arith.constant 0 : index
    %c0_0 = arith.constant 0 : index
    %0 = vector.load %arg1[%c0, %c0_0] : memref<8x128xbf16, #tpu.memory_space<vmem>>, vector<8x128xbf16>
    %c0_1 = arith.constant 0 : index
    %c0_2 = arith.constant 0 : index
    %1 = vector.load %arg2[%c0_1, %c0_2] : memref<128x128xbf16, #tpu.memory_space<vmem>>, vector<128x128xbf16>
    %c0_3 = arith.constant 0 : index
    %c0_4 = arith.constant 0 : index
    %2 = vector.load %arg3[%c0_3, %c0_4] : memref<1x128xf32, #tpu.memory_space<vmem>>, vector<1x128xf32>
    %cst = arith.constant dense<0.000000e+00> : vector<8x128xf32>
    %3 = tpu.matmul %0, %1, %cst {dimension_numbers = #tpu.dot_dimension_numbers<[1], [0], [0], [1], [0, 0, 1, 1], [], []>} : vector<8x128xbf16>, vector<128x128xbf16>, vector<8x128xf32> -> vector<8x128xf32>
    %4 = vector.broadcast %2 : vector<1x128xf32> to vector<8x128xf32>
    %5 = arith.addf %3, %4 : vector<8x128xf32>
    %cst_5 = arith.constant 0.000000e+00 : f32
    %6 = vector.broadcast %cst_5 : f32 to vector<8x128xf32>
    %7 = arith.maximumf %5, %6 : vector<8x128xf32>
    %8 = arith.truncf %7 : vector<8x128xf32> to vector<8x128xbf16>
    %c0_6 = arith.constant 0 : index
    %c0_7 = arith.constant 0 : index
    %9 = vector.load %arg4[%c0_6, %c0_7] : memref<128x128xbf16, #tpu.memory_space<vmem>>, vector<128x128xbf16>
    %c0_8 = arith.constant 0 : index
    %c0_9 = arith.constant 0 : index
    %10 = vector.load %arg5[%c0_8, %c0_9] : memref<1x128xf32, #tpu.memory_space<vmem>>, vector<1x128xf32>
    %cst_10 = arith.constant dense<0.000000e+00> : vector<8x128xf32>
    %11 = tpu.matmul %8, %9, %cst_10 {dimension_numbers = #tpu.dot_dimension_numbers<[1], [0], [0], [1], [0, 0, 1, 1], [], []>} : vector<8x128xbf16>, vector<128x128xbf16>, vector<8x128xf32> -> vector<8x128xf32>
    %12 = vector.broadcast %10 : vector<1x128xf32> to vector<8x128xf32>
    %13 = arith.addf %11, %12 : vector<8x128xf32>
    %cst_11 = arith.constant 0.000000e+00 : f32
    %14 = vector.broadcast %cst_11 : f32 to vector<8x128xf32>
    %15 = arith.maximumf %13, %14 : vector<8x128xf32>
    %c0_12 = arith.constant 0 : index
    %c0_13 = arith.constant 0 : index
    %16 = vector.load %arg6[%c0_12, %c0_13] : memref<8x128xf32, #tpu.memory_space<vmem>>, vector<8x128xf32>
    tpu.vector_store %arg6[%c0_12, %c0_13], %15 {strides = array<i32>} : memref<8x128xf32, #tpu.memory_space<vmem>>, vector<8x128xf32>,
    return
  }
  func.func @transform_0(%arg0: i32) -> (i32, i32) {
    %c0_i32 = arith.constant 0 : i32
    %c0_i32_0 = arith.constant 0 : i32
    return %arg0, %c0_i32 : i32, i32
  }
  func.func @transform_1(%arg0: i32) -> (i32, i32) {
    %c0_i32 = arith.constant 0 : i32
    %c0_i32_0 = arith.constant 0 : i32
    %c0_i32_1 = arith.constant 0 : i32
    return %c0_i32, %c0_i32_0 : i32, i32
  }
  func.func @transform_2(%arg0: i32) -> (i32, i32) {
    %c0_i32 = arith.constant 0 : i32
    %c0_i32_0 = arith.constant 0 : i32
    %c0_i32_1 = arith.constant 0 : i32
    return %c0_i32, %c0_i32_0 : i32, i32
  }
  func.func @transform_3(%arg0: i32) -> (i32, i32) {
    %c0_i32 = arith.constant 0 : i32
    %c0_i32_0 = arith.constant 0 : i32
    %c0_i32_1 = arith.constant 0 : i32
    return %c0_i32, %c0_i32_0 : i32, i32
  }
  func.func @transform_4(%arg0: i32) -> (i32, i32) {
    %c0_i32 = arith.constant 0 : i32
    %c0_i32_0 = arith.constant 0 : i32
    %c0_i32_1 = arith.constant 0 : i32
    return %c0_i32, %c0_i32_0 : i32, i32
  }
  func.func @transform_5(%arg0: i32) -> (i32, i32) {
    %c0_i32 = arith.constant 0 : i32
    %c0_i32_0 = arith.constant 0 : i32
    return %arg0, %c0_i32 : i32, i32
  }
}

</mosaic_0001>

<bundles_post_ra>
// kernel: fcnet_forward.1
= control target key start
LH: loop header
LB: loop body
LE: loop exit
PB: predicated region body
PF: predicated region fallthrough
CT: control target
= control target key end

     0   :  { %v382_v1 = vmov 0.0   ;;  %vm383_vm0 = vmmov 0   ;;  %s484_s0 = inlined_call_operand.vmem [shape: bf16[8,128], index: 0, kind: input, shape index: {}]   ;;  %s485_s1 = inlined_call_operand.vmem [shape: bf16[128,128], index: 1, kind: input, shape index: {}]   ;;  %s486_s2 = inlined_call_operand.vmem [shape: f32[1,128], index: 2, kind: input, shape index: {}]   ;;  %s487_s3 = inlined_call_operand.vmem [shape: bf16[128,128], index: 3, kind: input, shape index: {}]   ;;  %s488_s4 = inlined_call_operand.vmem [shape: f32[1,128], index: 4, kind: input, shape index: {}]   ;;  %s489_s5 = inlined_call_operand.hbm [shape: f32[8,128], index: 5, kind: output, shape index: {}]  }
   0x1   :  { %v342_v0 = vld [vmem:[%s485_s1] sm:$0xff]   ;;  %299 = vmatprep.subr.bf16.mxu0 %v382_v1  ;;  %319 = vmatprep.subr.bf16.mxu1 %v382_v1  ;;  %v343_v2 = vld [vmem:[%s485_s1 + $0x8] sm:$0xff]   ;;  %v344_v3 = vld [vmem:[%s485_s1 + $0x10] sm:$0xff]  }
   0x2   :  { %300 = vmatpush3.bf16.msra.mxu0 %v342_v0  ;;  %315 = vmatprep.mubr.msk.bf16.mxu0 %vm383_vm0, %v382_v1  ;;  %v350_v4 = vld [vmem:[%s487_s3] sm:$0xff]   ;;  %v345_v5 = vld [vmem:[%s485_s1 + $0x18] sm:$0xff]   ;;  %v351_v6 = vld [vmem:[%s487_s3 + $0x8] sm:$0xff]  }
   0x3   :  { %301 = vmatprep.subr.bf16.mxu0 %v382_v1  ;;  %335 = vmatprep.mubr.msk.bf16.mxu1 %vm383_vm0, %v382_v1  ;;  %v346_v7 = vld [vmem:[%s485_s1 + $0x20] sm:$0xff]   ;;  %v352_v8 = vld [vmem:[%s487_s3 + $0x10] sm:$0xff]  }
   0x4   :  { %320 = vmatpush3.bf16.msra.mxu1 %v350_v4 }
   0x5   :  { %321 = vmatprep.subr.bf16.mxu1 %v382_v1 }
   0x6   :  { %302 = vmatpush3.bf16.msra.mxu0 %v343_v2 }
   0x7   :  { %303 = vmatprep.subr.bf16.mxu0 %v382_v1 }
   0x8   :  { %322 = vmatpush3.bf16.msra.mxu1 %v351_v6 }
   0x9   :  { %323 = vmatprep.subr.bf16.mxu1 %v382_v1 }
   0xa   :  { %304 = vmatpush3.bf16.msra.mxu0 %v344_v3 }
   0xb   :  { %305 = vmatprep.subr.bf16.mxu0 %v382_v1 }
   0xe   :  { %306 = vmatpush3.bf16.msra.mxu0 %v345_v5 }
   0xf   :  { %307 = vmatprep.subr.bf16.mxu0 %v382_v1 }
  0x10   :  { %10 = vsyncpa [#allocation3], 0  ;;  %v347_v9 = vld [vmem:[%s485_s1 + $0x28] sm:$0xff]   ;;  %324 = vmatpush3.bf16.msra.mxu1 %v352_v8  ;;  %v353_v10 = vld [vmem:[%s487_s3 + $0x18] sm:$0xff]   ;;  %s384_s29 = smov [#allocation2]  }
  0x11   :  { %325 = vmatprep.subr.bf16.mxu1 %v382_v1  ;;  %v348_v11 = vld [vmem:[%s485_s1 + $0x30] sm:$0xff]   ;;  %v354_v12 = vld [vmem:[%s487_s3 + $0x20] sm:$0xff]   ;;  %v349_v13 = vld [vmem:[%s485_s1 + $0x38] sm:$0xff]  }
  0x12   :  { %308 = vmatpush3.bf16.msra.mxu0 %v346_v7  ;;  %v355_v14 = vld [vmem:[%s487_s3 + $0x28] sm:$0xff]   ;;  %v22_v15 = vld [vmem:[%s484_s0] sm:$0xf]  ;;  %v356_v16 = vld [vmem:[%s487_s3 + $0x30] sm:$0xff]  }
  0x13   :  { %309 = vmatprep.subr.bf16.mxu0 %v382_v1  ;;  %v357_v17 = vld [vmem:[%s487_s3 + $0x38] sm:$0xff]   ;;  %v263_v18 = vld [vmem:[%s486_s2] ss:$0 sm:$0xff]  ;;  %s255_s3 = sshll.u32 %s384_s29, 4  ;;  %s256_s3 = int_to_ptr.vmem [resolvable:$true] %s255_s3 }
  0x14   :  { %326 = vmatpush3.bf16.msra.mxu1 %v353_v10  ;;  %v272_v26 = vld [vmem:[%s488_s4] ss:$0 sm:$0xff]  ;;  %s358_s2 = scalar_lea.vmem %s256_s3, 128  ;;  %p363_p1 = scmp.lt.s32.totalorder %s256_s3, %s256_s3 }
  0x15   :  { %327 = vmatprep.subr.bf16.mxu1 %v382_v1  ;;  %p359_p0 = scmp.ne.s32.totalorder %s256_s3, %s358_s2  ;;  %p364_p2 = scmp.lt.s32.totalorder %s358_s2, %s358_s2 }
  0x16   :  { %310 = vmatpush3.bf16.msra.mxu0 %v347_v9 }
  0x17   :  { %311 = vmatprep.subr.bf16.mxu0 %v382_v1  ;;  %p365_p3 = por %p364_p2, %p363_p1 }
  0x18   :  { %328 = vmatpush3.bf16.msra.mxu1 %v354_v12 }
  0x19   :  { %329 = vmatprep.subr.bf16.mxu1 %v382_v1  ;;  %p366_p4 = pnand %p365_p3, %p359_p0 }
  0x1a   :  { %312 = vmatpush3.bf16.msra.mxu0 %v348_v11 }
  0x1b   :  { %313 = vmatprep.subr.bf16.mxu0 %v382_v1 }
  0x1c   :  { %330 = vmatpush3.bf16.msra.mxu1 %v355_v14 }
  0x1d   :  { %331 = vmatprep.subr.bf16.mxu1 %v382_v1 }
  0x1e   :  { %314 = vmatpush3.bf16.msra.mxu0 %v349_v13 }
  0x20   :  { %332 = vmatpush3.bf16.msra.mxu1 %v356_v16 }
  0x21   :  { %316 = vmatmul.mubr.bf16.vlgmr.msra.gmra.mrb[0].mxu0 %v22_v15  ;;  %333 = vmatprep.subr.bf16.mxu1 %v382_v1 }
  0x24   :  { %334 = vmatpush3.bf16.msra.mxu1 %v357_v17 }
  0xf4   :  { %v128_v19 = vpop.f32.mrb[0].mxu0 }
  0xf5   :  { %v129_v20 = vadd.f32 %v263_v18, %v128_v19  ;;  %v317_v21 = vpop.f32.mrb[1].mxu0 }
  0xf6   :  { %v131_v22 = vpop.f32.mrb[2].mxu0 }
  0xf7   :  { %v134_v23 = vmax.f32 %v129_v20, 0.0  ;;  %v318_v24 = vpop.f32.mrb[3].mxu0 }
  0xf9   :  { %v135_v25 = vpack.c.bf16 %v134_v23, %v134_v23 }
  0xfb   :  { %336 = vmatmul.mubr.bf16.vlgmr.msra.gmra.mrb[0].mxu1 %v135_v25 }
 0x1ce   :  { %v241_v27 = vpop.f32.mrb[0].mxu1 }
 0x1cf   :  { %v242_v28 = vadd.f32 %v272_v26, %v241_v27  ;;  %v337_v29 = vpop.f32.mrb[1].mxu1 }
 0x1d0   :  { %v244_v30 = vpop.f32.mrb[2].mxu1 }
 0x1d1   :  { %v247_v31 = vmax.f32 %v242_v28, 0.0  ;;  %v338_v32 = vpop.f32.mrb[3].mxu1 }
 0x1d3   :  { %248 = vst [vmem:[#allocation2] sm:$0xff] %v247_v31 }
 0x1d4   :  { %369 = shalt.err (!%p366_p4)
}
 0x1d5   :  { %s370_s4 = scalar_lea.hbm %s489_s5, 128 }
 0x1d6   :  { %p371_p5 = scmp.ne.s32.totalorder %s489_s5, %s370_s4  ;;  %p374_p6 = scmp.lt.u32.totalorder %s370_s4, %s489_s5 }
 0x1d8   :  { %p376_p7 = pnand %p374_p6, %p371_p5 }
 0x1da   :  { %379 = shalt.err (!%p376_p7)
}
 0x1db   :  { %258 = dma.vmem_to_hbm [thread:$0]  %s256_s3, 128, %s489_s5, [#allocation3]  }
 0x1dc   :  { %380 = dma.done.wait [#allocation3], 128  }
 0x1dd   :  { %381 = vsyncadd [#allocation3], 4294967168 }
 0x1de   :  { %262 = vsyncpa [#allocation3], 1 }

</bundles_post_ra>
